<compile_context>
chip_gen: v6e
topology: v6e:2x2x1
jax: 0.10.0
libtpu: 0.0.40
codegen_flags: <defaults>
</compile_context>

<pallas_src>
import math

import jax
import jax.numpy as jnp
from jax.experimental import pallas as pl
from jax.experimental.pallas import tpu as pltpu

HIDDEN1 = 200
HIDDEN2 = 30
H1_PAD = 256          # HIDDEN1 padded to lane multiple (zero weights/biases)
H2_PAD = 128          # HIDDEN2 padded to lane multiple (zero weights/biases)
LANE = 128
NEG_INF = -1e30       # finite "-inf" for padded logit columns


def _round_up(n, m):
    return ((n + m - 1) // m) * m


def _reinforce_kernel(x_ref, w1_ref, b1_ref, w2_ref, b2_ref, w3_ref, b3_ref,
                      out_ref):
    x = x_ref[...]  # (TM, state_size) f32

    # ----- Linear(state_size, 256pad) + ReLU (Dropout = identity in eval) ---
    h1 = jnp.dot(x.astype(jnp.bfloat16), w1_ref[...],
                 preferred_element_type=jnp.float32)
    h1 = jnp.maximum(h1 + b1_ref[...], 0.0)          # b1 (1, 256) broadcasts

    # ----- Linear(256pad, 128pad) + ReLU -----
    h2 = jnp.dot(h1.astype(jnp.bfloat16), w2_ref[...],
                 preferred_element_type=jnp.float32)
    h2 = jnp.maximum(h2 + b2_ref[...], 0.0)

    # ----- Linear(128pad, action_padded) -----
    # Padded columns have zero weights and bias = -1e30, so they contribute
    # exactly 0 to the softmax below (lane-dense 128-wide unmasked store).
    logits = jnp.dot(h2.astype(jnp.bfloat16), w3_ref[...],
                     preferred_element_type=jnp.float32)
    logits = logits + b3_ref[...]

    # ----- numerically stable softmax over last dim -----
    m = jnp.max(logits, axis=-1, keepdims=True)
    e = jnp.exp(logits - m)
    denom = jnp.sum(e, axis=-1, keepdims=True)
    out_ref[...] = (e * pl.reciprocal(denom, approx=True)).astype(out_ref.dtype)


def prepare_params(params):
    """Cast weights to bf16 and pad hidden/output dims to lane multiples."""
    w1, b1, w2, b2, w3, b3 = params
    action_size = w3.shape[1]
    n_pad = _round_up(max(action_size, LANE), LANE)
    state_size = w1.shape[0]

    # Layer 1: (state, 200) -> (state, 256), zero pad (ReLU(0) = 0).
    w1p = jnp.zeros((state_size, H1_PAD), jnp.float32).at[:, :HIDDEN1].set(w1)
    b1p = jnp.zeros((1, H1_PAD), jnp.float32).at[:, :HIDDEN1].set(
        b1.reshape(1, -1))

    # Layer 2: (200, 30) -> (256, 128), zero pad in both dims.
    w2p = jnp.zeros((H1_PAD, H2_PAD), jnp.float32).at[:HIDDEN1, :HIDDEN2].set(w2)
    b2p = jnp.zeros((1, H2_PAD), jnp.float32).at[:, :HIDDEN2].set(
        b2.reshape(1, -1))

    # Layer 3: (30, A) -> (128, 128pad); padded output columns get bias -1e30
    # so they softmax to exactly 0.
    w3p = jnp.zeros((H2_PAD, n_pad), jnp.float32).at[:HIDDEN2, :action_size].set(w3)
    b3p = jnp.full((1, n_pad), NEG_INF, jnp.float32).at[:, :action_size].set(
        b3.reshape(1, -1))

    return (w1p.astype(jnp.bfloat16), b1p,
            w2p.astype(jnp.bfloat16), b2p,
            w3p.astype(jnp.bfloat16), b3p)


def reinforce_net_forward(x, prepared_params, action_size, *, tm=1024):
    """x: [B, state_size] f32. Returns softmax probs [B, action_size] bf16."""
    w1, b1, w2, b2, w3, b3 = prepared_params
    B, state_size = x.shape
    n_pad = w3.shape[1]

    # --- Batch tiling: minimize padding; force >=2 steps for v7x megacore ---
    n_steps = max(1, pl.cdiv(B, tm))
    if B > 64:
        n_steps = max(n_steps, 2)        # both v7x TensorCores get work
    TM = _round_up(pl.cdiv(B, n_steps), 8)
    B_pad = TM * n_steps
    if B_pad != B:
        x = jnp.pad(x, ((0, B_pad - B), (0, 0)))

    # Rough per-step VMEM estimate (double-buffered x/out + f32/bf16 temps);
    # only raise the scoped limit if a large tm sweep would exceed the 16 MiB
    # default (v5e).  Cap below v7x's 64 MiB physical VMEM.
    est_bytes = TM * (2 * 4 * max(state_size, LANE)   # x, 2 buffers, f32
                      + 2 * 2 * n_pad                 # out, 2 buffers, bf16
                      + 6 * H1_PAD + 6 * H2_PAD + 6 * n_pad) + (1 << 20)
    cp_kwargs = dict(dimension_semantics=("parallel",))
    if est_bytes > (14 << 20):
        cp_kwargs["vmem_limit_bytes"] = int(min(est_bytes + (4 << 20), 48 << 20))

    # Weights/biases: full-array blocks with constant index maps => resident
    # in VMEM across all grid steps; only x/out tiles stream.
    resident = lambda a: pl.BlockSpec(a.shape, lambda i: (0,) * a.ndim)

    out = pl.pallas_call(
        _reinforce_kernel,
        out_shape=jax.ShapeDtypeStruct((B_pad, n_pad), jnp.bfloat16),
        grid_spec=pltpu.PrefetchScalarGridSpec(
            num_scalar_prefetch=0,
            grid=(n_steps,),
            in_specs=[
                pl.BlockSpec((TM, state_size), lambda i: (i, 0)),
                resident(w1), resident(b1),
                resident(w2), resident(b2),
                resident(w3), resident(b3),
            ],
            out_specs=pl.BlockSpec((TM, n_pad), lambda i: (i, 0)),
        ),
        compiler_params=pltpu.CompilerParams(**cp_kwargs),
    )(x, w1, b1, w2, b2, w3, b3)

    # bf16 slice: half the bytes of the old f32 slice read.  Consumers that
    # want f32 can cast the tiny [B, action_size] result themselves.
    return out[:B, :action_size]


def init_params(key, state_size, action_size):
    """Deterministic init matching nn.Linear's U(-1/sqrt(fan_in), 1/sqrt(fan_in)).

    Weights are [in_features, out_features] so the kernel computes x @ W + b
    (equivalent to PyTorch's x @ W.T + b with W stored [out, in]).
    """
    dims = [(state_size, HIDDEN1), (HIDDEN1, HIDDEN2), (HIDDEN2, action_size)]
    params = []
    keys = jax.random.split(key, 2 * len(dims))
    for i, (fan_in, fan_out) in enumerate(dims):
        bound = 1.0 / math.sqrt(fan_in)
        w = jax.random.uniform(keys[2 * i], (fan_in, fan_out),
                               minval=-bound, maxval=bound, dtype=jnp.float32)
        b = jax.random.uniform(keys[2 * i + 1], (fan_out,),
                               minval=-bound, maxval=bound, dtype=jnp.float32)
        params += [w, b]
    return tuple(params)


def _reference_forward(x, prepared_params, action_size):
    """Pure-JAX reference using the same (bf16) weights, f32 math."""
    w1, b1, w2, b2, w3, b3 = prepared_params
    h1 = jnp.maximum(x @ w1.astype(jnp.float32) + b1, 0.0)
    h2 = jnp.maximum(h1 @ w2.astype(jnp.float32) + b2, 0.0)
    logits = h2 @ w3.astype(jnp.float32) + b3
    return jax.nn.softmax(logits, axis=-1)[:, :action_size]


if __name__ == "__main__":
    key = jax.random.PRNGKey(0)
    k_x, k_p = jax.random.split(key)

    batch = 8
    state_size = 16
    action_size = 8

    x = jax.random.normal(k_x, (batch, state_size), dtype=jnp.float32)
    params = init_params(k_p, state_size, action_size)
    prepared = prepare_params(params)

    probs = reinforce_net_forward(x, prepared, action_size)
    probs = jax.block_until_ready(probs)

    # sanity: shape, rows sum to ~1 (approx reciprocal + bf16 output =>
    # relaxed tolerance), agreement with a pure-JAX reference of the same
    # computation.
    assert probs.shape == (batch, action_size)
    probs_f32 = probs.astype(jnp.float32)
    assert jnp.allclose(jnp.sum(probs_f32, axis=-1), 1.0, atol=2e-2)
    ref = _reference_forward(x, prepared, action_size)
    assert jnp.allclose(probs_f32, ref, atol=3e-2)

    print("KERNEL_OK")
</pallas_src>

<mosaic_0001>
module attributes {stable_mosaic.version = 11 : i64} {
  func.func @_reinforce_kernel(%arg0: i32, %arg1: memref<8x16xf32, #tpu.memory_space<vmem>>, %arg2: memref<16x256xbf16, #tpu.memory_space<vmem>>, %arg3: memref<1x256xf32, #tpu.memory_space<vmem>>, %arg4: memref<256x128xbf16, #tpu.memory_space<vmem>>, %arg5: memref<1x128xf32, #tpu.memory_space<vmem>>, %arg6: memref<128x128xbf16, #tpu.memory_space<vmem>>, %arg7: memref<1x128xf32, #tpu.memory_space<vmem>>, %arg8: memref<8x128xbf16, #tpu.memory_space<vmem>>) attributes {dimension_semantics = [#tpu.dimension_semantics<parallel>], iteration_bounds = array<i64: 1>, scalar_prefetch = 0 : i64, scratch_operands = 0 : i64, tpu.core_type = #tpu.core_type<tc>, window_params = [{transform_indices = @transform_0, window_bounds = array<i64: 8, 16>}, {pipeline_mode = #tpu.pipeline_mode<synchronous>, transform_indices = @transform_1, window_bounds = array<i64: 16, 256>}, {pipeline_mode = #tpu.pipeline_mode<synchronous>, transform_indices = @transform_2, window_bounds = array<i64: 1, 256>}, {pipeline_mode = #tpu.pipeline_mode<synchronous>, transform_indices = @transform_3, window_bounds = array<i64: 256, 128>}, {pipeline_mode = #tpu.pipeline_mode<synchronous>, transform_indices = @transform_4, window_bounds = array<i64: 1, 128>}, {pipeline_mode = #tpu.pipeline_mode<synchronous>, transform_indices = @transform_5, window_bounds = array<i64: 128, 128>}, {pipeline_mode = #tpu.pipeline_mode<synchronous>, transform_indices = @transform_6, window_bounds = array<i64: 1, 128>}, {transform_indices = @transform_7, window_bounds = array<i64: 8, 128>}]} {
    %c0 = arith.constant 0 : index
    %c0_0 = arith.constant 0 : index
    %0 = vector.load %arg1[%c0, %c0_0] : memref<8x16xf32, #tpu.memory_space<vmem>>, vector<8x16xf32>
    %1 = arith.truncf %0 : vector<8x16xf32> to vector<8x16xbf16>
    %c0_1 = arith.constant 0 : index
    %c0_2 = arith.constant 0 : index
    %2 = vector.load %arg2[%c0_1, %c0_2] : memref<16x256xbf16, #tpu.memory_space<vmem>>, vector<16x256xbf16>
    %cst = arith.constant dense<0.000000e+00> : vector<8x256xf32>
    %3 = tpu.matmul %1, %2, %cst {dimension_numbers = #tpu.dot_dimension_numbers<[1], [0], [0], [1], [0, 0, 1, 1], [], []>} : vector<8x16xbf16>, vector<16x256xbf16>, vector<8x256xf32> -> vector<8x256xf32>
    %c0_3 = arith.constant 0 : index
    %c0_4 = arith.constant 0 : index
    %4 = vector.load %arg3[%c0_3, %c0_4] : memref<1x256xf32, #tpu.memory_space<vmem>>, vector<1x256xf32>
    %5 = vector.broadcast %4 : vector<1x256xf32> to vector<8x256xf32>
    %6 = arith.addf %3, %5 : vector<8x256xf32>
    %cst_5 = arith.constant 0.000000e+00 : f32
    %7 = vector.broadcast %cst_5 : f32 to vector<8x256xf32>
    %8 = arith.maximumf %6, %7 : vector<8x256xf32>
    %9 = arith.truncf %8 : vector<8x256xf32> to vector<8x256xbf16>
    %c0_6 = arith.constant 0 : index
    %c0_7 = arith.constant 0 : index
    %10 = vector.load %arg4[%c0_6, %c0_7] : memref<256x128xbf16, #tpu.memory_space<vmem>>, vector<256x128xbf16>
    %cst_8 = arith.constant dense<0.000000e+00> : vector<8x128xf32>
    %11 = tpu.matmul %9, %10, %cst_8 {dimension_numbers = #tpu.dot_dimension_numbers<[1], [0], [0], [1], [0, 0, 1, 1], [], []>} : vector<8x256xbf16>, vector<256x128xbf16>, vector<8x128xf32> -> vector<8x128xf32>
    %c0_9 = arith.constant 0 : index
    %c0_10 = arith.constant 0 : index
    %12 = vector.load %arg5[%c0_9, %c0_10] : memref<1x128xf32, #tpu.memory_space<vmem>>, vector<1x128xf32>
    %13 = vector.broadcast %12 : vector<1x128xf32> to vector<8x128xf32>
    %14 = arith.addf %11, %13 : vector<8x128xf32>
    %cst_11 = arith.constant 0.000000e+00 : f32
    %15 = vector.broadcast %cst_11 : f32 to vector<8x128xf32>
    %16 = arith.maximumf %14, %15 : vector<8x128xf32>
    %17 = arith.truncf %16 : vector<8x128xf32> to vector<8x128xbf16>
    %c0_12 = arith.constant 0 : index
    %c0_13 = arith.constant 0 : index
    %18 = vector.load %arg6[%c0_12, %c0_13] : memref<128x128xbf16, #tpu.memory_space<vmem>>, vector<128x128xbf16>
    %cst_14 = arith.constant dense<0.000000e+00> : vector<8x128xf32>
    %19 = tpu.matmul %17, %18, %cst_14 {dimension_numbers = #tpu.dot_dimension_numbers<[1], [0], [0], [1], [0, 0, 1, 1], [], []>} : vector<8x128xbf16>, vector<128x128xbf16>, vector<8x128xf32> -> vector<8x128xf32>
    %c0_15 = arith.constant 0 : index
    %c0_16 = arith.constant 0 : index
    %20 = vector.load %arg7[%c0_15, %c0_16] : memref<1x128xf32, #tpu.memory_space<vmem>>, vector<1x128xf32>
    %21 = vector.broadcast %20 : vector<1x128xf32> to vector<8x128xf32>
    %22 = arith.addf %19, %21 : vector<8x128xf32>
    %cst_17 = arith.constant dense<0xFF800000> : vector<8xf32>
    %23 = vector.multi_reduction <maximumf>, %22, %cst_17 [1] : vector<8x128xf32> to vector<8xf32>
    %24 = vector.shape_cast %23 : vector<8xf32> to vector<8x1xf32>
    %25 = vector.broadcast %24 : vector<8x1xf32> to vector<8x128xf32>
    %26 = arith.subf %22, %25 : vector<8x128xf32>
    %27 = math.exp %26 : vector<8x128xf32>
    %cst_18 = arith.constant dense<0.000000e+00> : vector<8xf32>
    %28 = vector.multi_reduction <add>, %27, %cst_18 [1] : vector<8x128xf32> to vector<8xf32>
    %29 = vector.shape_cast %28 : vector<8xf32> to vector<8x1xf32>
    %30 = tpu.reciprocal %29 {approx = true} : vector<8x1xf32> -> vector<8x1xf32>
    %31 = vector.broadcast %30 : vector<8x1xf32> to vector<8x128xf32>
    %32 = arith.mulf %27, %31 : vector<8x128xf32>
    %33 = arith.truncf %32 : vector<8x128xf32> to vector<8x128xbf16>
    %c0_19 = arith.constant 0 : index
    %c0_20 = arith.constant 0 : index
    %34 = vector.load %arg8[%c0_19, %c0_20] : memref<8x128xbf16, #tpu.memory_space<vmem>>, vector<8x128xbf16>
    tpu.vector_store %arg8[%c0_19, %c0_20], %33 {strides = array<i32>} : memref<8x128xbf16, #tpu.memory_space<vmem>>, vector<8x128xbf16>,
    return
  }
  func.func @transform_0(%arg0: i32) -> (i32, i32) {
    %c0_i32 = arith.constant 0 : i32
    %c0_i32_0 = arith.constant 0 : i32
    return %arg0, %c0_i32 : i32, i32
  }
  func.func @transform_1(%arg0: i32) -> (i32, i32) {
    %c0_i32 = arith.constant 0 : i32
    %c0_i32_0 = arith.constant 0 : i32
    %c0_i32_1 = arith.constant 0 : i32
    return %c0_i32, %c0_i32_0 : i32, i32
  }
  func.func @transform_2(%arg0: i32) -> (i32, i32) {
    %c0_i32 = arith.constant 0 : i32
    %c0_i32_0 = arith.constant 0 : i32
    %c0_i32_1 = arith.constant 0 : i32
    return %c0_i32, %c0_i32_0 : i32, i32
  }
  func.func @transform_3(%arg0: i32) -> (i32, i32) {
    %c0_i32 = arith.constant 0 : i32
    %c0_i32_0 = arith.constant 0 : i32
    %c0_i32_1 = arith.constant 0 : i32
    return %c0_i32, %c0_i32_0 : i32, i32
  }
  func.func @transform_4(%arg0: i32) -> (i32, i32) {
    %c0_i32 = arith.constant 0 : i32
    %c0_i32_0 = arith.constant 0 : i32
    %c0_i32_1 = arith.constant 0 : i32
    return %c0_i32, %c0_i32_0 : i32, i32
  }
  func.func @transform_5(%arg0: i32) -> (i32, i32) {
    %c0_i32 = arith.constant 0 : i32
    %c0_i32_0 = arith.constant 0 : i32
    %c0_i32_1 = arith.constant 0 : i32
    return %c0_i32, %c0_i32_0 : i32, i32
  }
  func.func @transform_6(%arg0: i32) -> (i32, i32) {
    %c0_i32 = arith.constant 0 : i32
    %c0_i32_0 = arith.constant 0 : i32
    %c0_i32_1 = arith.constant 0 : i32
    return %c0_i32, %c0_i32_0 : i32, i32
  }
  func.func @transform_7(%arg0: i32) -> (i32, i32) {
    %c0_i32 = arith.constant 0 : i32
    %c0_i32_0 = arith.constant 0 : i32
    return %arg0, %c0_i32 : i32, i32
  }
}

</mosaic_0001>

<bundles_post_ra>
// kernel: tpu_custom_call.1
= control target key start
LH: loop header
LB: loop body
LE: loop exit
PB: predicated region body
PF: predicated region fallthrough
CT: control target
= control target key end

     0   :  { %12 = vsyncpa [#allocation3], 0  ;;  %s779_s0 = inlined_call_operand.hbm [shape: f32[8,16], index: 0, kind: input, shape index: {}]   ;;  %s780_s1 = inlined_call_operand.hbm [shape: bf16[16,256], index: 1, kind: input, shape index: {}]   ;;  %s781_s2 = inlined_call_operand.vmem [shape: f32[1,256], index: 2, kind: input, shape index: {}]   ;;  %s782_s3 = inlined_call_operand.hbm [shape: bf16[256,128], index: 3, kind: input, shape index: {}]   ;;  %s783_s4 = inlined_call_operand.vmem [shape: f32[1,128], index: 4, kind: input, shape index: {}]   ;;  %s784_s5 = inlined_call_operand.hbm [shape: bf16[128,128], index: 5, kind: input, shape index: {}]   ;;  %s785_s6 = inlined_call_operand.vmem [shape: f32[1,128], index: 6, kind: input, shape index: {}]   ;;  %s786_s7 = inlined_call_operand.hbm [shape: bf16[8,128], index: 7, kind: output, shape index: {}]  }
   0x1   :  { %13 = vsyncpa [#allocation6], 0 }
   0x2   :  { %14 = vsyncpa [#allocation9], 0 }
   0x3   :  { %15 = vsyncpa [#allocation4], 0  ;;  %s703_s24 = smov [#allocation5]  }
   0x4   :  { %s31_s25 = sshll.u32 %s703_s24, 4  ;;  %s32_s25 = int_to_ptr.vmem [resolvable:$true] %s31_s25 }
   0x5   :  { %s603_s26 = scalar_lea.vmem %s32_s25, 256  ;;  %p608_p1 = scmp.lt.s32.totalorder %s32_s25, %s32_s25 }
   0x6   :  { %p604_p0 = scmp.ne.s32.totalorder %s32_s25, %s603_s26  ;;  %p609_p2 = scmp.lt.s32.totalorder %s603_s26, %s603_s26 }
   0x8   :  { %p610_p3 = por %p609_p2, %p608_p1 }
   0xa   :  { %p611_p4 = pnand %p610_p3, %p604_p0 }
   0xc   :  { %614 = shalt.err (!%p611_p4)
}
   0xd   :  { %s704_s27 = smov 128   ;;  %s705_s28 = smov 8  }
   0xe   :  { %37 = dma.hbm_to_vmem [thread:$0]  %s780_s1, 256, %s32_s25, [#allocation6], %s704_s27, %s704_s27, %s705_s28  }
   0xf   :  { %s706_s8 = smov [#allocation2]   ;;  %s707_s10 = smov [#allocation7]  }
  0x10   :  { %s22_s9 = sshll.u32 %s706_s8, 4  ;;  %s45_s11 = sshll.u32 %s707_s10, 4  ;;  %s23_s9 = int_to_ptr.vmem [resolvable:$true] %s22_s9  ;;  %s46_s11 = int_to_ptr.vmem [resolvable:$true] %s45_s11 }
  0x11   :  { %s623_s12 = scalar_lea.vmem %s23_s9, 128  ;;  %p628_p6 = scmp.lt.s32.totalorder %s23_s9, %s23_s9 }
  0x12   :  { %p624_p5 = scmp.ne.s32.totalorder %s23_s9, %s623_s12  ;;  %p629_p7 = scmp.lt.s32.totalorder %s623_s12, %s623_s12 }
  0x14   :  { %p630_p8 = por %p629_p7, %p628_p6 }
  0x16   :  { %p631_p9 = pnand %p630_p8, %p624_p5 }
  0x18   :  { %634 = shalt.err (!%p631_p9)
}
  0x19   :  { %25 = dma.hbm_to_vmem [thread:$0]  %s779_s0, 128, %s23_s9, [#allocation3]  }
  0x1a   :  { %s643_s15 = scalar_lea.vmem %s46_s11, 2048  ;;  %p648_p11 = scmp.lt.s32.totalorder %s46_s11, %s46_s11 }
  0x1b   :  { %p644_p10 = scmp.ne.s32.totalorder %s46_s11, %s643_s15  ;;  %p649_p12 = scmp.lt.s32.totalorder %s643_s15, %s643_s15 }
  0x1d   :  { %p650_p13 = por %p649_p12, %p648_p11 }
  0x1f   :  { %p651_p0 = pnand %p650_p13, %p644_p10 }
  0x21   :  { %654 = shalt.err (!%p651_p0)
}
  0x22   :  { %s708_s1 = smov 64   ;;  %s709_s16 = smov 4  }
  0x23   :  { %51 = dma.hbm_to_vmem [thread:$0]  %s782_s3, 2048, %s46_s11, [#allocation6], %s708_s1, %s708_s1, %s709_s16  }
  0x24   :  { %s710_s19 = smov [#allocation8]  }
  0x25   :  { %s59_s20 = sshll.u32 %s710_s19, 4  ;;  %s60_s20 = int_to_ptr.vmem [resolvable:$true] %s59_s20 }
  0x26   :  { %s663_s21 = scalar_lea.vmem %s60_s20, 1024  ;;  %p668_p2 = scmp.lt.s32.totalorder %s60_s20, %s60_s20 }
  0x27   :  { %p664_p1 = scmp.ne.s32.totalorder %s60_s20, %s663_s21  ;;  %p669_p3 = scmp.lt.s32.totalorder %s663_s21, %s663_s21 }
  0x29   :  { %p670_p4 = por %p669_p3, %p668_p2 }
  0x2b   :  { %p671_p5 = pnand %p670_p4, %p664_p1 }
  0x2d   :  { %674 = shalt.err (!%p671_p5)
}
  0x2e   :  { %65 = dma.hbm_to_vmem [thread:$0]  %s784_s5, 1024, %s60_s20, [#allocation9], %s708_s1, %s708_s1, %s709_s16  }
  0x2f   :  { %695 = dma.done.wait [#allocation3], 128  }
  0x30   :  { %696 = vsyncadd [#allocation3], 4294967168 }
  0x31   :  { %697 = dma.done.wait [#allocation6], 2304  }
  0x32   :  { %698 = vsyncadd [#allocation6], 4294964992 }
  0x33   :  { %699 = dma.done.wait [#allocation9], 1024  }
  0x34   :  { %700 = vsyncadd [#allocation9], 4294966272  ;;  %v711_v0 = vmov 0   ;;  %v564_v1 = vld [vmem:[#allocation5 + $0x4] ss:$8 sps:$4 sm:$0xff]   ;;  %v81_v3 = vld [vmem:[#allocation2] sm:$0xff]  ;;  %v87_v27 = vlaneseq }
  0x35   :  { %143 = vmatprep.mubr.bf16.mxu0 %v711_v0  ;;  %v566_v2 = vld [vmem:[#allocation5] ss:$8 sps:$4 sm:$0xff]   ;;  %125 = vmatprep.subr.bf16.mxu0 %v564_v1  ;;  %v82_v4 = vpack.c.bf16 %v81_v3, %v81_v3  ;;  %vm107_vm0 = vcmask 130048   ;;  %v571_v9 = vld [vmem:[#allocation7 + $0x68] sm:$0xff]   ;;  %v573_v11 = vld [vmem:[#allocation7 + $0x60] sm:$0xff]   ;;  %v712_v22 = vmov 0.0  }
  0x36   :  { %v567_v5 = vld [vmem:[#allocation7 + $0x78] sm:$0xff]   ;;  %126 = vmatpush1.bf16.msra.mxu0 %v566_v2  ;;  %v569_v7 = vld [vmem:[#allocation7 + $0x70] sm:$0xff]   ;;  %v572_v10 = vld [vmem:[#allocation7 + $0x28] sm:$0xff]   ;;  %v88_v28 = vshrl.u32 %v87_v27, 7  ;;  %vm713_vm1 = vmmov 0  }
  0x37   :  { %v568_v6 = vld [vmem:[#allocation7 + $0x38] sm:$0xff]   ;;  %501 = vmatprep.subr.bf16.mxu1 %v567_v5  ;;  %v570_v8 = vld [vmem:[#allocation7 + $0x30] sm:$0xff]   ;;  %v574_v12 = vld [vmem:[#allocation7 + $0x20] sm:$0xff]   ;;  %532 = vmatprep.subr.bf16.mxu0 %v712_v22 }
  0x38   :  { %502 = vmatpush3.bf16.msra.mxu1 %v568_v6  ;;  %v575_v13 = vld [vmem:[#allocation7 + $0x58] sm:$0xff]   ;;  %v577_v15 = vld [vmem:[#allocation7 + $0x50] sm:$0xff]   ;;  %v579_v17 = vld [vmem:[#allocation7 + $0x48] sm:$0xff]   ;;  %v89_v29 = vsub.s32 0, %v88_v28  ;;  %v93_v31 = vsub.s32 1, %v88_v28 }
  0x39   :  { %474 = vmatmul.mubr.msk.bf16.vlgmr.msra.gmra.mxu0 %vm107_vm0, %v82_v4  ;;  %503 = vmatprep.subr.bf16.mxu1 %v569_v7  ;;  %v576_v14 = vld [vmem:[#allocation7 + $0x18] sm:$0xff]   ;;  %v578_v16 = vld [vmem:[#allocation7 + $0x10] sm:$0xff]   ;;  %v580_v18 = vld [vmem:[#allocation7 + $0x8] sm:$0xff]  }
  0x3a   :  { %v581_v19 = vld [vmem:[#allocation7 + $0x40] sm:$0xff]   ;;  %v583_v21 = vld [vmem:[#allocation8 + $0x38] sm:$0xff]   ;;  %v584_v23 = vld [vmem:[#allocation8 + $0x30] sm:$0xff]   ;;  %548 = vmatprep.mubr.msk.bf16.mxu0 %vm713_vm1, %v712_v22 }
  0x3b   :  { %v582_v20 = vld [vmem:[#allocation7] sm:$0xff]   ;;  %533 = vmatpush3.bf16.msra.mxu0 %v583_v21  ;;  %v585_v24 = vld [vmem:[#allocation8 + $0x28] sm:$0xff]   ;;  %v587_v26 = vld [vmem:[#allocation8 + $0x18] sm:$0xff]  }
  0x3c   :  { %504 = vmatpush3.bf16.msra.mxu1 %v570_v8  ;;  %534 = vmatprep.subr.bf16.mxu0 %v712_v22  ;;  %v586_v25 = vld [vmem:[#allocation8 + $0x20] sm:$0xff]   ;;  %v85_v30 = vld [vmem:[%s781_s2] sm:$0x3]  ;;  %v588_v44 = vld [vmem:[#allocation8 + $0x10] sm:$0xff]  }
  0x3d   :  { %505 = vmatprep.subr.bf16.mxu1 %v571_v9  ;;  %v90_v32 = vrot.slane %v85_v30, %v89_v29  ;;  %v94_v33 = vrot.slane %v85_v30, %v93_v31  ;;  %v589_v45 = vld [vmem:[#allocation8 + $0x8] sm:$0xff]   ;;  %v590_v46 = vld [vmem:[#allocation8] sm:$0xff]  }
  0x3e   :  { %v475_v48 = vld [vmem:[%s783_s4] ss:$0 sm:$0xff]  ;;  %s714_s4 = smov [#allocation10]  }
  0x3f   :  { %535 = vmatpush3.bf16.msra.mxu0 %v584_v23  ;;  %v492_v56 = vld [vmem:[%s785_s6] ss:$0 sm:$0xff]  ;;  %s461_s26 = sshll.u32 %s714_s4, 4  ;;  %s462_s26 = int_to_ptr.vmem [resolvable:$true] %s461_s26 }
  0x40   :  { %506 = vmatpush3.bf16.msra.mxu1 %v572_v10  ;;  %536 = vmatprep.subr.bf16.mxu0 %v712_v22  ;;  %s675_s6 = scalar_lea.vmem %s462_s26, 64  ;;  %p680_p7 = scmp.lt.s32.totalorder %s462_s26, %s462_s26 }
  0x41   :  { %507 = vmatprep.subr.bf16.mxu1 %v573_v11  ;;  %p676_p6 = scmp.ne.s32.totalorder %s462_s26, %s675_s6  ;;  %p681_p8 = scmp.lt.s32.totalorder %s675_s6, %s675_s6 }
  0x43   :  { %537 = vmatpush3.bf16.msra.mxu0 %v585_v24  ;;  %p682_p9 = por %p681_p8, %p680_p7 }
  0x44   :  { %508 = vmatpush3.bf16.msra.mxu1 %v574_v12  ;;  %538 = vmatprep.subr.bf16.mxu0 %v712_v22 }
  0x45   :  { %509 = vmatprep.subr.bf16.mxu1 %v575_v13  ;;  %p683_p10 = pnand %p682_p9, %p676_p6 }
  0x47   :  { %539 = vmatpush3.bf16.msra.mxu0 %v586_v25 }
  0x48   :  { %510 = vmatpush3.bf16.msra.mxu1 %v576_v14  ;;  %540 = vmatprep.subr.bf16.mxu0 %v712_v22 }
  0x49   :  { %511 = vmatprep.subr.bf16.mxu1 %v577_v15 }
  0x4b   :  { %541 = vmatpush3.bf16.msra.mxu0 %v587_v26 }
  0x4c   :  { %512 = vmatpush3.bf16.msra.mxu1 %v578_v16  ;;  %542 = vmatprep.subr.bf16.mxu0 %v712_v22 }
  0x4d   :  { %513 = vmatprep.subr.bf16.mxu1 %v579_v17 }
  0x4f   :  { %543 = vmatpush3.bf16.msra.mxu0 %v588_v44 }
  0x50   :  { %514 = vmatpush3.bf16.msra.mxu1 %v580_v18  ;;  %544 = vmatprep.subr.bf16.mxu0 %v712_v22 }
  0x51   :  { %515 = vmatprep.subr.bf16.mxu1 %v581_v19 }
  0x53   :  { %545 = vmatpush3.bf16.msra.mxu0 %v589_v45 }
  0x54   :  { %516 = vmatpush3.bf16.msra.mxu1 %v582_v20  ;;  %546 = vmatprep.subr.bf16.mxu0 %v712_v22 }
  0x57   :  { %547 = vmatpush3.bf16.msra.mxu0 %v590_v46 }
  0xf9   :  { %v145_v34 = vpop.f32.mrf.mxu0 }
  0xfa   :  { %v146_v35 = vadd.f32 %v145_v34, %v90_v32 }
  0xfb   :  { %v147_v36 = vpop.f32.mrf.mxu0 }
  0xfc   :  { %v148_v37 = vadd.f32 %v147_v36, %v94_v33  ;;  %v152_v38 = vmax.f32 %v146_v35, 0.0 }
  0xfd   :  { %v149_v39 = vpop.f32.mrf.mxu0 }
  0xfe   :  { %v153_v40 = vmax.f32 %v148_v37, 0.0  ;;  %v154_v43 = vpack.c.bf16 %v152_v38, %v152_v38 }
  0xff   :  { %v150_v41 = vpop.f32.mrf.mxu0 }
 0x100   :  { %v155_v42 = vpack.c.bf16 %v153_v40, %v153_v40 }
 0x102   :  { %323 = vmatprep.mubr.bf16.mxu1 %v155_v42 }
 0x103   :  { %324 = vmatmul.mubr.bf16.vlgmr.msra.gmra.mxu1 %v154_v43 }
 0x1c3   :  { %v517_v47 = vpop.f32.mrf.mxu1 }
 0x1c5   :  { %v518_v49 = vpop.f32.mrf.mxu1 }
 0x1c6   :  { %v519_v50 = vadd.f32 %v518_v49, %v517_v47 }
 0x1c7   :  { %v520_v51 = vpop.f32.mrf.mxu1 }
 0x1c8   :  { %v326_v52 = vadd.f32 %v519_v50, %v475_v48 }
 0x1c9   :  { %v521_v53 = vpop.f32.mrf.mxu1 }
 0x1ca   :  { %v331_v54 = vmax.f32 %v326_v52, 0.0 }
 0x1cc   :  { %v332_v55 = vpack.c.bf16 %v331_v54, %v331_v54 }
 0x1ce   :  { %549 = vmatmul.mubr.bf16.vlgmr.msra.gmra.mxu0 %v332_v55 }
 0x28e   :  { %v438_v57 = vpop.f32.mrf.mxu0 }
 0x28f   :  { %v439_v58 = vadd.f32 %v492_v56, %v438_v57 }
 0x290   :  { %v550_v59 = vpop.f32.mrf.mxu0 }
 0x291   :  { %444 = vmax.xlane.f32.xlu0 %v439_v58 }
 0x292   :  { %v441_v60 = vpop.f32.mrf.mxu0 }
 0x294   :  { %v551_v61 = vpop.f32.mrf.mxu0 }
 0x31a   :  { %v445_v62 = vpop.xlane.xlu0 %444 }
 0x31b   :  { %v446_v63 = vsub.f32 %v439_v58, %v445_v62 }
 0x31d   :  { %v447_v0 = vmul.f32 1.442695, %v446_v63 }
 0x31f   :  { %591 = vpow2.f32 %v447_v0 }
 0x32c   :  { %v592_v1 = vpop.eup %591 }
 0x32d   :  { %449 = vadd.xlane.f32.xlu0 %v592_v1 }
 0x3b6   :  { %v450_v2 = vpop.xlane.xlu0 %449 }
 0x3b7   :  { %593 = vrcp.f32 %v450_v2 }
 0x3c4   :  { %v594_v3 = vpop.eup %593 }
 0x3c5   :  { %v452_v4 = vmul.f32 %v594_v3, %v592_v1 }
 0x3c7   :  { %v453_v5 = vpack.c.bf16 %v452_v4, %v452_v4 }
 0x3c9   :  { %454 = vst [vmem:[#allocation10] sm:$0xf] %v453_v5 }
 0x3ca   :  { %686 = shalt.err (!%p683_p10)
}
 0x3cb   :  { %464 = dma.vmem_to_hbm [thread:$0]  %s462_s26, 64, %s786_s7, [#allocation4]  }
 0x3cc   :  { %701 = dma.done.wait [#allocation4], 64  }
 0x3cd   :  { %702 = vsyncadd [#allocation4], 4294967232 }
 0x3ce   :  { %468 = vsyncpa [#allocation3], 1 }
 0x3cf   :  { %469 = vsyncpa [#allocation6], 1 }
 0x3d0   :  { %470 = vsyncpa [#allocation9], 1 }
 0x3d1   :  { %471 = vsyncpa [#allocation4], 1 }

</bundles_post_ra>
